<compile_context>
chip_gen: v7x
topology: tpu7x:2x2x1
jax: 0.10.0
libtpu: 0.0.40
codegen_flags: <defaults>
</compile_context>

<pallas_src>
import jax
import jax.numpy as jnp
from jax.experimental import pallas as pl
from jax.experimental.pallas import tpu as pltpu

# ----------------------------- hyperparameters ------------------------------
C_IN = 4        # input waveform channels
C_OUT = 4       # output waveform channels (forward_wave_channel())
H = 32          # hidden feature size of the encoder
K = 4           # kernel == stride of encoder/decoder convs
CK = C_IN * K   # flattened encoder input features per frame
COK = C_OUT * K  # flattened decoder output features per frame

B = 2           # batch (test)
L = 64          # input waveform length (test, divisible by K)

_MAX_TN = 1024  # lane-tile cap over the frame axis (>=512 already ~85% roofline)


def _pick_lane_tile(m: int) -> int:
    """Largest lane tile (multiple of 128, capped) for m frames."""
    m128 = ((m + 127) // 128) * 128
    return min(m128, _MAX_TN)


# ------------------------------- Pallas kernel -------------------------------
def _encdec_kernel(frames_ref, w_enc_ref, w_dec_ref, b_ref, out_ref):
    """Fused encoder conv (as matmul) + ReLU + decoder transposed conv.

    Transposed, lane-dense layout: lanes = frames.
      frames_ref : (CK,  TN)      bf16  im2col'd input frames (frames on lanes)
      w_enc_ref  : (H,   CK)      bf16
      w_dec_ref  : (COK, H)       bf16
      b_ref      : (H+COK, 1)     f32   [b_enc ; b_dec (repeated per tap)]
      out_ref    : (COK, TN)      f32
    """
    b_enc = b_ref[:H, :]          # (H, 1)
    b_dec = b_ref[H:, :]          # (COK, 1)

    # encoder: Conv1d(stride=K, kernel=K) == matmul over the CK contraction.
    hid = jnp.dot(w_enc_ref[...], frames_ref[...],
                  preferred_element_type=jnp.float32)        # (H, TN) f32
    hid = jnp.maximum(hid + b_enc, 0.0).astype(jnp.bfloat16)  # ReLU, back to bf16

    # decoder: ConvTranspose1d(stride=K, kernel=K) == matmul over H.
    out = jnp.dot(w_dec_ref[...], hid,
                  preferred_element_type=jnp.float32)        # (COK, TN) f32
    out_ref[...] = (out + b_dec).astype(out_ref.dtype)


def _encdec_pallas(frames, w_enc, w_dec, biases, tn):
    ck, m_pad = frames.shape
    h, _ = w_enc.shape
    cok, _ = w_dec.shape
    assert m_pad % tn == 0 and tn % 128 == 0

    grid = (m_pad // tn,)
    return pl.pallas_call(
        _encdec_kernel,
        out_shape=jax.ShapeDtypeStruct((cok, m_pad), jnp.float32),
        grid_spec=pltpu.PrefetchScalarGridSpec(
            num_scalar_prefetch=0,
            grid=grid,
            in_specs=[
                pl.BlockSpec((ck, tn), lambda i: (0, i)),       # frames tile
                pl.BlockSpec((h, ck), lambda i: (0, 0)),        # enc weight (resident)
                pl.BlockSpec((cok, h), lambda i: (0, 0)),       # dec weight (resident)
                pl.BlockSpec((h + cok, 1), lambda i: (0, 0)),   # packed biases
            ],
            out_specs=pl.BlockSpec((cok, tn), lambda i: (0, i)),
        ),
        compiler_params=pltpu.CompilerParams(
            dimension_semantics=("parallel",)),
    )(frames, w_enc, w_dec, biases)


# ------------------------------ model wrapper --------------------------------
class EncDecModel:
    """JAX/Pallas port of echidna EncDecModel with a Conv1d encoder and a
    ConvTranspose1d decoder (stride == kernel), fully fused in one kernel."""

    def __init__(self, key):
        k1, k2, k3, k4 = jax.random.split(key, 4)
        # encoder Conv1d weight: (H, C_IN, K), bias (H,)  -- PyTorch layout
        scale_e = 1.0 / jnp.sqrt(C_IN * K)
        self.w_enc = jax.random.uniform(k1, (H, C_IN, K), jnp.float32,
                                        -scale_e, scale_e)
        self.b_enc = jax.random.uniform(k2, (H,), jnp.float32,
                                        -scale_e, scale_e)
        # decoder ConvTranspose1d weight: (H, C_OUT, K), bias (C_OUT,)
        scale_d = 1.0 / jnp.sqrt(H)
        self.w_dec = jax.random.uniform(k3, (H, C_OUT, K), jnp.float32,
                                        -scale_d, scale_d)
        self.b_dec = jax.random.uniform(k4, (C_OUT,), jnp.float32,
                                        -scale_d, scale_d)

    # ---- length bookkeeping (mirrors forward_wave_length / reverse) ----
    def forward_wave_length(self, l_in: int) -> int:
        return (l_in // K) * K

    def forward_wave_channel(self) -> int:
        return C_OUT

    def reverse_wave_length(self, l_out: int) -> int:
        return l_out

    def forward_embd_feature(self):
        return None

    def forward_embd_dim(self):
        return None

    # ----------------------------- forward ------------------------------
    def __call__(self, x):
        """x: (B, C_IN, L) float32  ->  {'waves': (B, C_OUT, (L//K)*K)}"""
        b, c, l = x.shape
        l_enc = l // K
        l_use = l_enc * K
        m = b * l_enc

        # im2col in bf16, transposed (lane-dense) layout: (C*K, B*L_enc)
        xb = x[:, :, :l_use].astype(jnp.bfloat16)
        frames = xb.reshape(b, c, l_enc, K)           # (B, C, T, K)
        frames = jnp.transpose(frames, (1, 3, 0, 2))  # (C, K, B, T)
        frames = frames.reshape(c * K, m)             # (CK, M)

        # pad frames to a lane-tile multiple (ragged tail handled by padding)
        tn = _pick_lane_tile(m)
        m_pad = ((m + tn - 1) // tn) * tn
        if m_pad != m:
            frames = jnp.pad(frames, ((0, 0), (0, m_pad - m)))

        # weights in matmul form (bf16 operands, f32 accumulation in-kernel)
        w_enc_m = self.w_enc.reshape(H, CK).astype(jnp.bfloat16)      # (H, CK)
        w_dec_m = self.w_dec.reshape(H, COK).T.astype(jnp.bfloat16)   # (COK, H)
        # packed biases: [b_enc ; b_dec repeated per tap (row index = co*K+k)]
        biases = jnp.concatenate(
            [self.b_enc, jnp.repeat(self.b_dec, K)])[:, None]         # (H+COK, 1)

        y = _encdec_pallas(frames, w_enc_m, w_dec_m, biases, tn)      # (COK, M_pad)
        y = y[:, :m]

        # (C_OUT*K, B*L_enc) -> (B, C_OUT, L)
        waves = y.reshape(C_OUT, K, b, l_enc)
        waves = jnp.transpose(waves, (2, 0, 3, 1)).reshape(b, C_OUT, l_use)
        return {"waves": waves}


# ----------------------------- reference check -------------------------------
def _reference_forward(model: EncDecModel, x):
    """Pure-JAX reference: same math & precision policy (bf16 operands,
    f32 accumulation), independent row-major layout path."""
    b, c, l = x.shape
    l_enc = l // K
    xb = x[:, :, :l_enc * K].astype(jnp.bfloat16)
    frames = xb.reshape(b, c, l_enc, K)
    frames = jnp.transpose(frames, (0, 2, 1, 3)).reshape(b * l_enc, c * K)
    w_e = model.w_enc.reshape(H, CK).astype(jnp.bfloat16)
    hid = jnp.dot(frames, w_e.T, preferred_element_type=jnp.float32)
    hid = jnp.maximum(hid + model.b_enc[None, :], 0.0).astype(jnp.bfloat16)
    w_d = model.w_dec.reshape(H, COK).astype(jnp.bfloat16)
    y = jnp.dot(hid, w_d, preferred_element_type=jnp.float32)
    y = y + jnp.repeat(model.b_dec, K)[None, :]
    waves = y.reshape(b, l_enc, C_OUT, K)
    waves = jnp.transpose(waves, (0, 2, 1, 3)).reshape(b, C_OUT, l_enc * K)
    return waves


if __name__ == "__main__":
    key = jax.random.PRNGKey(0)
    k_in, k_par = jax.random.split(key)

    x = jax.random.normal(k_in, (B, C_IN, L), jnp.float32)
    model = EncDecModel(k_par)

    out = model(x)
    waves = jax.block_until_ready(out["waves"])

    ref = _reference_forward(model, x)
    assert waves.shape == (B, C_OUT, L), waves.shape
    assert jnp.allclose(waves, ref, atol=1e-3, rtol=1e-3), "mismatch vs reference"

    print("KERNEL_OK")
</pallas_src>

<mosaic_0001>
module attributes {stable_mosaic.version = 11 : i64} {
  func.func @_encdec_kernel(%arg0: i32, %arg1: memref<16x128xbf16, #tpu.memory_space<vmem>>, %arg2: memref<32x16xbf16, #tpu.memory_space<vmem>>, %arg3: memref<16x32xbf16, #tpu.memory_space<vmem>>, %arg4: memref<48x1xf32, #tpu.memory_space<vmem>>, %arg5: memref<16x128xf32, #tpu.memory_space<vmem>>) attributes {dimension_semantics = [#tpu.dimension_semantics<parallel>], iteration_bounds = array<i64: 1>, scalar_prefetch = 0 : i64, scratch_operands = 0 : i64, tpu.core_type = #tpu.core_type<tc>, window_params = [{transform_indices = @transform_0, window_bounds = array<i64: 16, 128>}, {pipeline_mode = #tpu.pipeline_mode<synchronous>, transform_indices = @transform_1, window_bounds = array<i64: 32, 16>}, {pipeline_mode = #tpu.pipeline_mode<synchronous>, transform_indices = @transform_2, window_bounds = array<i64: 16, 32>}, {pipeline_mode = #tpu.pipeline_mode<synchronous>, transform_indices = @transform_3, window_bounds = array<i64: 48, 1>}, {transform_indices = @transform_4, window_bounds = array<i64: 16, 128>}]} {
    %c0 = arith.constant 0 : index
    %c0_0 = arith.constant 0 : index
    %0 = vector.load %arg4[%c0, %c0_0] : memref<48x1xf32, #tpu.memory_space<vmem>>, vector<32x1xf32>
    %c32 = arith.constant 32 : index
    %c0_1 = arith.constant 0 : index
    %1 = vector.load %arg4[%c32, %c0_1] : memref<48x1xf32, #tpu.memory_space<vmem>>, vector<16x1xf32>
    %c0_2 = arith.constant 0 : index
    %c0_3 = arith.constant 0 : index
    %2 = vector.load %arg2[%c0_2, %c0_3] : memref<32x16xbf16, #tpu.memory_space<vmem>>, vector<32x16xbf16>
    %c0_4 = arith.constant 0 : index
    %c0_5 = arith.constant 0 : index
    %3 = vector.load %arg1[%c0_4, %c0_5] : memref<16x128xbf16, #tpu.memory_space<vmem>>, vector<16x128xbf16>
    %cst = arith.constant dense<0.000000e+00> : vector<32x128xf32>
    %4 = tpu.matmul %2, %3, %cst {dimension_numbers = #tpu.dot_dimension_numbers<[1], [0], [0], [1], [0, 0, 1, 1], [], []>} : vector<32x16xbf16>, vector<16x128xbf16>, vector<32x128xf32> -> vector<32x128xf32>
    %5 = vector.broadcast %0 : vector<32x1xf32> to vector<32x128xf32>
    %6 = arith.addf %4, %5 : vector<32x128xf32>
    %cst_6 = arith.constant 0.000000e+00 : f32
    %7 = vector.broadcast %cst_6 : f32 to vector<32x128xf32>
    %8 = arith.maximumf %6, %7 : vector<32x128xf32>
    %9 = arith.truncf %8 : vector<32x128xf32> to vector<32x128xbf16>
    %c0_7 = arith.constant 0 : index
    %c0_8 = arith.constant 0 : index
    %10 = vector.load %arg3[%c0_7, %c0_8] : memref<16x32xbf16, #tpu.memory_space<vmem>>, vector<16x32xbf16>
    %cst_9 = arith.constant dense<0.000000e+00> : vector<16x128xf32>
    %11 = tpu.matmul %10, %9, %cst_9 {dimension_numbers = #tpu.dot_dimension_numbers<[1], [0], [0], [1], [0, 0, 1, 1], [], []>} : vector<16x32xbf16>, vector<32x128xbf16>, vector<16x128xf32> -> vector<16x128xf32>
    %12 = vector.broadcast %1 : vector<16x1xf32> to vector<16x128xf32>
    %13 = arith.addf %11, %12 : vector<16x128xf32>
    %c0_10 = arith.constant 0 : index
    %c0_11 = arith.constant 0 : index
    %14 = vector.load %arg5[%c0_10, %c0_11] : memref<16x128xf32, #tpu.memory_space<vmem>>, vector<16x128xf32>
    tpu.vector_store %arg5[%c0_10, %c0_11], %13 {strides = array<i32>} : memref<16x128xf32, #tpu.memory_space<vmem>>, vector<16x128xf32>,
    return
  }
  func.func @transform_0(%arg0: i32) -> (i32, i32) {
    %c0_i32 = arith.constant 0 : i32
    %c0_i32_0 = arith.constant 0 : i32
    return %c0_i32, %arg0 : i32, i32
  }
  func.func @transform_1(%arg0: i32) -> (i32, i32) {
    %c0_i32 = arith.constant 0 : i32
    %c0_i32_0 = arith.constant 0 : i32
    %c0_i32_1 = arith.constant 0 : i32
    return %c0_i32, %c0_i32_0 : i32, i32
  }
  func.func @transform_2(%arg0: i32) -> (i32, i32) {
    %c0_i32 = arith.constant 0 : i32
    %c0_i32_0 = arith.constant 0 : i32
    %c0_i32_1 = arith.constant 0 : i32
    return %c0_i32, %c0_i32_0 : i32, i32
  }
  func.func @transform_3(%arg0: i32) -> (i32, i32) {
    %c0_i32 = arith.constant 0 : i32
    %c0_i32_0 = arith.constant 0 : i32
    %c0_i32_1 = arith.constant 0 : i32
    return %c0_i32, %c0_i32_0 : i32, i32
  }
  func.func @transform_4(%arg0: i32) -> (i32, i32) {
    %c0_i32 = arith.constant 0 : i32
    %c0_i32_0 = arith.constant 0 : i32
    return %c0_i32, %arg0 : i32, i32
  }
}

</mosaic_0001>

<bundles_post_ra>
// kernel: tpu_custom_call.1
= control target key start
LH: loop header
LB: loop body
LE: loop exit
PB: predicated region body
PF: predicated region fallthrough
CT: control target
= control target key end

     0   :  { %vm67_vm0 = vcmask 130048   ;;  %v272_v3 = vmov 0   ;;  %s345_s0 = inlined_call_operand.vmem [shape: bf16[16,128], index: 0, kind: input, shape index: {}]   ;;  %s346_s1 = inlined_call_operand.vmem [shape: bf16[32,16], index: 1, kind: input, shape index: {}]   ;;  %s347_s2 = inlined_call_operand.vmem [shape: bf16[16,32], index: 2, kind: input, shape index: {}]   ;;  %s348_s3 = inlined_call_operand.vmem [shape: f32[48,1], index: 3, kind: input, shape index: {}]   ;;  %s349_s4 = inlined_call_operand.hbm [shape: f32[16,128], index: 4, kind: output, shape index: {}]  }
   0x1   :  { %v244_v0 = vld [vmem:[%s345_s0] sm:$0xff]   ;;  %v246_v2 = vld [vmem:[%s346_s1 + $0x8] sm:$0xff]   ;;  %242 = vset.pattern.permute.xlu0 %v272_v3  ;;  %v21_v5 = vld [vmem:[%s348_s3 + $0x10] sm:$0xff]  ;;  %243 = vset.pattern.permute.xlu1 %v272_v3 }
   0x2   :  { %v245_v1 = vld [vmem:[%s346_s1] sm:$0xff]   ;;  %222 = vmatprep.subr.bf16.mxu0 %v244_v0  ;;  %v20_v6 = vld [vmem:[%s348_s3 + $0x8] sm:$0xff]  ;;  %43 = vperm.xlu1 %243, %v21_v5  }
   0x3   :  { %223 = vmatpush3.bf16.msra.mxu0 %v244_v0  ;;  %224 = vmatprep.mubr.msk.bf16.mxu0 %vm67_vm0, %v245_v1  ;;  %v19_v4 = vld [vmem:[%s348_s3] sm:$0xff] }
   0x4   :  { %33 = vperm.xlu0 %242, %v19_v4  }
   0x5   :  { %9 = vsyncpa [#allocation3], 0  ;;  %v22_v7 = vld [vmem:[%s348_s3 + $0x18] sm:$0xff]  ;;  %v23_v8 = vld [vmem:[%s348_s3 + $0x20] sm:$0xff]  ;;  %v273_v10 = vmov 0.0   ;;  %vm274_vm1 = vmmov 0  }
   0x6   :  { %225 = vmatmul.mubr.msk.bf16.vlgmr.msra.gmra.mrb[0].mxu0 %vm67_vm0, %v246_v2  ;;  %48 = vperm.xlu1 %243, %v22_v7   ;;  %v24_v9 = vld [vmem:[%s348_s3 + $0x28] sm:$0xff]  ;;  %v247_v29 = vld [vmem:[%s347_s2] sm:$0xff]   ;;  %vm146_vm2 = vcmask 261120   ;;  %s275_s6 = smov [#allocation2]  }
   0x7   :  { %228 = vmatprep.subr.bf16.mxu1 %v273_v10  ;;  %232 = vmatprep.mubr.msk.bf16.mxu1 %vm274_vm1, %v273_v10  ;;  %s198_s7 = sshll.u32 %s275_s6, 4  ;;  %s199_s7 = int_to_ptr.vmem [resolvable:$true] %s198_s7 }
   0x8   :  { %38 = vperm.xlu0 %242, %v20_v6   ;;  %s248_s8 = scalar_lea.vmem %s199_s7, 256  ;;  %p253_p1 = scmp.lt.s32.totalorder %s199_s7, %s199_s7 }
   0x9   :  { %p249_p0 = scmp.ne.s32.totalorder %s199_s7, %s248_s8  ;;  %p254_p2 = scmp.lt.s32.totalorder %s248_s8, %s248_s8 }
   0xa   :  { %138 = vperm.xlu1 %243, %v24_v9  }
   0xb   :  { %p255_p3 = por %p254_p2, %p253_p1 }
   0xc   :  { %133 = vperm.xlu0 %242, %v23_v8  }
   0xd   :  { %p256_p4 = pnand %p255_p3, %p249_p0 }
  0x81   :  { %v44_v11 = vpop.permute.xlu1 %43 }
  0x83   :  { %v34_v12 = vpop.permute.xlu0 %33 }
  0x85   :  { %v49_v16 = vpop.permute.xlu1 %48 }
  0x87   :  { %v39_v19 = vpop.permute.xlu0 %38 }
  0x89   :  { %v139_v34 = vpop.permute.xlu1 %138 }
  0x8b   :  { %v134_v30 = vpop.permute.xlu0 %133 }
  0xd9   :  { %v226_v13 = vpop.f32.mrb[0].mxu0 }
  0xda   :  { %v117_v14 = vadd.f32 %v226_v13, %v44_v11  ;;  %v108_v15 = vpop.f32.mrb[1].mxu0 }
  0xdb   :  { %v109_v17 = vadd.f32 %v108_v15, %v34_v12  ;;  %v227_v18 = vpop.f32.mrb[2].mxu0 }
  0xdc   :  { %v120_v20 = vadd.f32 %v227_v18, %v49_v16  ;;  %v111_v21 = vpop.f32.mrb[3].mxu0  ;;  %v125_v23 = vmax.f32 %v117_v14, 0.0 }
  0xdd   :  { %v112_v22 = vadd.f32 %v111_v21, %v39_v19  ;;  %v123_v25 = vmax.f32 %v109_v17, 0.0 }
  0xde   :  { %v126_v24 = vmax.f32 %v120_v20, 0.0 }
  0xdf   :  { %v124_v26 = vmax.f32 %v112_v22, 0.0 }
  0xe0   :  { %v128_v27 = vpack.c.bf16 %v126_v24, %v125_v23 }
  0xe1   :  { %v127_v28 = vpack.c.bf16 %v124_v26, %v123_v25 }
  0xe3   :  { %229 = vmatpush3.bf16.msra.mxu1 %v127_v28 }
  0xe4   :  { %230 = vmatprep.subr.bf16.mxu1 %v273_v10 }
  0xe7   :  { %231 = vmatpush3.bf16.msra.mxu1 %v128_v27 }
  0xea   :  { %233 = vmatmul.mubr.msk.bf16.vlgmr.msra.gmra.mrb[0].mxu1 %vm146_vm2, %v247_v29 }
 0x1bd   :  { %v184_v31 = vpop.f32.mrb[0].mxu1 }
 0x1be   :  { %v185_v32 = vadd.f32 %v184_v31, %v134_v30  ;;  %v234_v33 = vpop.f32.mrb[1].mxu1 }
 0x1bf   :  { %v187_v35 = vpop.f32.mrb[2].mxu1 }
 0x1c0   :  { %191 = vst [vmem:[#allocation2] sm:$0xff] %v185_v32  ;;  %v188_v36 = vadd.f32 %v187_v35, %v139_v34  ;;  %v235_v37 = vpop.f32.mrb[3].mxu1 }
 0x1c2   :  { %192 = vst [vmem:[#allocation2 + $0x8] sm:$0xff] %v188_v36 }
 0x1c3   :  { %259 = shalt.err (!%p256_p4)
}
 0x1c4   :  { %s260_s10 = scalar_lea.hbm %s349_s4, 256 }
 0x1c5   :  { %p261_p5 = scmp.ne.s32.totalorder %s349_s4, %s260_s10  ;;  %p264_p6 = scmp.lt.u32.totalorder %s260_s10, %s349_s4 }
 0x1c7   :  { %p266_p7 = pnand %p264_p6, %p261_p5 }
 0x1c9   :  { %269 = shalt.err (!%p266_p7)
}
 0x1ca   :  { %s276_s15 = smov 128   ;;  %s277_s16 = smov 8  }
 0x1cb   :  { %204 = dma.vmem_to_hbm [thread:$0]  %s199_s7, 256, %s349_s4, [#allocation3], %s276_s15, %s276_s15, %s277_s16  }
 0x1cc   :  { %270 = dma.done.wait [#allocation3], 256  }
 0x1cd   :  { %271 = vsyncadd [#allocation3], 4294967040 }
 0x1ce   :  { %208 = vsyncpa [#allocation3], 1 }

</bundles_post_ra>
